<compile_context>
chip_gen: v5e
topology: v5e:2x2
jax: 0.10.0
libtpu: 0.0.40
codegen_flags: <defaults>
</compile_context>

<pallas_src>
import functools
import math

import jax
import jax.numpy as jnp
from jax.experimental import pallas as pl
from jax.experimental.pallas import tpu as pltpu

NBITS = 8


# ---------------------------------------------------------------------------
# Kernels
# ---------------------------------------------------------------------------
def _all_bits_interleaved_kernel(img_ref, out_ref, *, nbits, msb_first):
    """img_ref: (tile_r, W) u8 -> out_ref: (tile_r, W*nbits) u8, bit axis fastest."""
    x = img_ref[...]                                     # uint8 tile, no widening
    tile_r, w = x.shape
    planes = []
    for b in range(nbits):                               # static unroll, nbits == 8
        shift = (nbits - 1 - b) if msb_first else b
        planes.append(((x & jnp.uint8(1 << shift)) != 0).astype(jnp.uint8))
    # Interleave in VMEM: (tile_r, W, nbits) -> lane-dense (tile_r, W*nbits).
    stacked = jnp.stack(planes, axis=-1)
    out_ref[...] = stacked.reshape(tile_r, w * nbits)    # single unmasked store


def _all_bits_planemajor_kernel(img_ref, out_ref, *, nbits, msb_first):
    """Fallback: img_ref (tile_r, W) u8 -> out_ref (nbits, tile_r, W) u8 planes."""
    x = img_ref[...]
    for b in range(nbits):
        shift = (nbits - 1 - b) if msb_first else b
        out_ref[b, :, :] = ((x & jnp.uint8(1 << shift)) != 0).astype(out_ref.dtype)


def _single_bit_kernel(img_ref, out_ref, *, shift):
    """img_ref: (tile_r, W) u8 -> out_ref: (tile_r, W) u8 single bit plane."""
    out_ref[...] = ((img_ref[...] & jnp.uint8(1 << shift)) != 0).astype(out_ref.dtype)


# ---------------------------------------------------------------------------
# Tiling
# ---------------------------------------------------------------------------
def _pick_tile_rows(rows, width, nbits=NBITS):
    """uint8-aware row tile.

    Multiple of 32 (uint8 packs 4 rows per sublane -> native (32, 128) vreg tile),
    ~8 MiB VMEM per step including double-buffered in+out (under the 16 MiB v5e
    scoped default), and >= 2 grid steps when possible so the 'parallel' grid
    axis can shard across v7x's two TensorCores.  Partial last blocks are fine
    (cdiv grid, elementwise work).
    """
    if rows <= 32:
        return rows                                      # full-dim block is always legal
    budget_rows = (8 << 20) // (2 * (1 + nbits) * width)  # double-buffered uint8 bytes
    tile = min(rows // 2, budget_rows, 1024)
    tile = max(32, (tile // 32) * 32)
    return tile


# ---------------------------------------------------------------------------
# Wrapper
# ---------------------------------------------------------------------------
def bitwise_transform_pallas(img, single_bit=None, *, nbits=NBITS, msb_first=True):
    """Pallas equivalent of BitwiseTransform.forward.

    Accepts a single (H, W) image or a batched (..., H, W) stack; leading dims
    and H are folded into one row axis so the whole batch is one pallas_call.
    Note: the interleaved fast-path fallback relies on eager execution for the
    try/except; this function is intended to be called outside jax.jit.
    """
    if img.ndim < 2:
        raise ValueError("expected at least a 2-D (H, W) image")
    if img.dtype != jnp.uint8:
        # Silent truncation of wider ints would decompose only the low 8 bits.
        raise TypeError(f"BitwiseTransform expects uint8 input, got {img.dtype}")

    *lead, width = img.shape
    rows = math.prod(lead)
    flat = img.reshape(rows, width)                      # free row-major reshape

    tile_r = _pick_tile_rows(rows, width, nbits)
    grid = (pl.cdiv(rows, tile_r),)                      # partial last block OK
    in_spec = pl.BlockSpec((tile_r, width), lambda i: (i, 0))
    cparams = pltpu.CompilerParams(dimension_semantics=("parallel",))

    if single_bit is not None:
        assert 0 <= single_bit < nbits, "single_bit out of range"
        shift = (nbits - 1 - single_bit) if msb_first else single_bit
        out = pl.pallas_call(
            functools.partial(_single_bit_kernel, shift=shift),
            out_shape=jax.ShapeDtypeStruct((rows, width), jnp.uint8),
            grid=grid,
            in_specs=[in_spec],
            out_specs=pl.BlockSpec((tile_r, width), lambda i: (i, 0)),
            compiler_params=cparams,
        )(flat)
        return out.reshape(*lead, width)

    try:
        # Fast path: interleave bits in-kernel -> on-HBM layout is already
        # (..., W, nbits); no extra XLA transpose / HBM round trip.
        out = pl.pallas_call(
            functools.partial(
                _all_bits_interleaved_kernel, nbits=nbits, msb_first=msb_first
            ),
            out_shape=jax.ShapeDtypeStruct((rows, width * nbits), jnp.uint8),
            grid=grid,
            in_specs=[in_spec],
            out_specs=pl.BlockSpec((tile_r, width * nbits), lambda i: (i, 0)),
            compiler_params=cparams,
        )(flat)
        return out.reshape(*lead, width, nbits)          # free metadata reshape
    except Exception:
        # TODO(synk): drop this fallback once the packed-u8 stack+reshape relayout
        # is guaranteed to lower on all deployed Mosaic versions.  The fallback
        # (plane-major output + moveaxis) costs one extra HBM round trip of the
        # 8x-sized output but is always lowerable.
        planes = pl.pallas_call(
            functools.partial(
                _all_bits_planemajor_kernel, nbits=nbits, msb_first=msb_first
            ),
            out_shape=jax.ShapeDtypeStruct((nbits, rows, width), jnp.uint8),
            grid=grid,
            in_specs=[in_spec],
            out_specs=pl.BlockSpec((nbits, tile_r, width), lambda i: (0, i, 0)),
            compiler_params=cparams,
        )(flat)
        return jnp.moveaxis(planes, 0, -1).reshape(*lead, width, nbits)


class BitwiseTransformPallas:
    """Mirror of the PyTorch BitwiseTransform module."""

    def __init__(self, single_bit):
        self.single_bit = single_bit

    def __call__(self, img):
        return bitwise_transform_pallas(img, self.single_bit)

    def __repr__(self):
        return self.__class__.__name__


if __name__ == "__main__":
    key = jax.random.PRNGKey(0)
    k1, k2 = jax.random.split(key)

    # Single grayscale image (H, W) uint8, as the data-pipeline transform sees it.
    H, W = 64, 128
    img = jax.random.randint(k1, (H, W), 0, 256, dtype=jnp.int32).astype(jnp.uint8)

    # Pure-JAX reference (np.unpackbits-style, MSB first).
    def dec2bin_ref(x, nbits=NBITS):
        shifts = jnp.arange(nbits - 1, -1, -1)
        return ((x.astype(jnp.int32)[..., None] >> shifts) & 1).astype(jnp.uint8)

    ref_all = dec2bin_ref(img)

    # Case 1: single_bit is None -> (H, W, 8) bit decomposition.
    y_all = jax.block_until_ready(BitwiseTransformPallas(single_bit=None)(img))
    assert y_all.shape == (H, W, NBITS), y_all.shape
    assert jnp.array_equal(y_all, ref_all), "mismatch vs reference (all bits)"

    # Case 2: single_bit given -> (H, W) single bit plane.
    bit = 3
    y_one = jax.block_until_ready(BitwiseTransformPallas(single_bit=bit)(img))
    assert y_one.shape == (H, W), y_one.shape
    assert jnp.array_equal(y_one, ref_all[:, :, bit]), "mismatch vs reference (single bit)"

    # Case 3: batched (N, H, W) through the functional API (single pallas_call).
    imgs = jax.random.randint(k2, (2, H, W), 0, 256, dtype=jnp.int32).astype(jnp.uint8)
    y_b = jax.block_until_ready(bitwise_transform_pallas(imgs))
    assert y_b.shape == (2, H, W, NBITS), y_b.shape
    assert jnp.array_equal(y_b, dec2bin_ref(imgs)), "mismatch vs reference (batched)"

    print("KERNEL_OK")
</pallas_src>

<mosaic_0001>
module attributes {stable_mosaic.version = 11 : i64} {
  func.func @_all_bits_interleaved_kernel(%arg0: i32, %arg1: memref<32x128xi8, #tpu.memory_space<vmem>>, %arg2: memref<32x1024xi8, #tpu.memory_space<vmem>>) attributes {dimension_semantics = [#tpu.dimension_semantics<parallel>], iteration_bounds = array<i64: 2>, scalar_prefetch = 0 : i64, scratch_operands = 0 : i64, tpu.core_type = #tpu.core_type<tc>, window_params = [{transform_indices = @transform_0, window_bounds = array<i64: 32, 128>}, {transform_indices = @transform_1, window_bounds = array<i64: 32, 1024>}]} {
    %c0 = arith.constant 0 : index
    %c0_0 = arith.constant 0 : index
    %0 = vector.load %arg1[%c0, %c0_0] : memref<32x128xi8, #tpu.memory_space<vmem>>, vector<32x128xi8>
    %c-128_i8 = arith.constant -128 : i8
    %1 = vector.broadcast %c-128_i8 : i8 to vector<32x128xi8>
    %2 = arith.andi %0, %1 : vector<32x128xi8>
    %c0_i8 = arith.constant 0 : i8
    %3 = vector.broadcast %c0_i8 : i8 to vector<32x128xi8>
    %4 = arith.cmpi ne, %2, %3 : vector<32x128xi8>
    %5 = arith.extui %4 : vector<32x128xi1> to vector<32x128xi8>
    %c64_i8 = arith.constant 64 : i8
    %6 = vector.broadcast %c64_i8 : i8 to vector<32x128xi8>
    %7 = arith.andi %0, %6 : vector<32x128xi8>
    %c0_i8_1 = arith.constant 0 : i8
    %8 = vector.broadcast %c0_i8_1 : i8 to vector<32x128xi8>
    %9 = arith.cmpi ne, %7, %8 : vector<32x128xi8>
    %10 = arith.extui %9 : vector<32x128xi1> to vector<32x128xi8>
    %c32_i8 = arith.constant 32 : i8
    %11 = vector.broadcast %c32_i8 : i8 to vector<32x128xi8>
    %12 = arith.andi %0, %11 : vector<32x128xi8>
    %c0_i8_2 = arith.constant 0 : i8
    %13 = vector.broadcast %c0_i8_2 : i8 to vector<32x128xi8>
    %14 = arith.cmpi ne, %12, %13 : vector<32x128xi8>
    %15 = arith.extui %14 : vector<32x128xi1> to vector<32x128xi8>
    %c16_i8 = arith.constant 16 : i8
    %16 = vector.broadcast %c16_i8 : i8 to vector<32x128xi8>
    %17 = arith.andi %0, %16 : vector<32x128xi8>
    %c0_i8_3 = arith.constant 0 : i8
    %18 = vector.broadcast %c0_i8_3 : i8 to vector<32x128xi8>
    %19 = arith.cmpi ne, %17, %18 : vector<32x128xi8>
    %20 = arith.extui %19 : vector<32x128xi1> to vector<32x128xi8>
    %c8_i8 = arith.constant 8 : i8
    %21 = vector.broadcast %c8_i8 : i8 to vector<32x128xi8>
    %22 = arith.andi %0, %21 : vector<32x128xi8>
    %c0_i8_4 = arith.constant 0 : i8
    %23 = vector.broadcast %c0_i8_4 : i8 to vector<32x128xi8>
    %24 = arith.cmpi ne, %22, %23 : vector<32x128xi8>
    %25 = arith.extui %24 : vector<32x128xi1> to vector<32x128xi8>
    %c4_i8 = arith.constant 4 : i8
    %26 = vector.broadcast %c4_i8 : i8 to vector<32x128xi8>
    %27 = arith.andi %0, %26 : vector<32x128xi8>
    %c0_i8_5 = arith.constant 0 : i8
    %28 = vector.broadcast %c0_i8_5 : i8 to vector<32x128xi8>
    %29 = arith.cmpi ne, %27, %28 : vector<32x128xi8>
    %30 = arith.extui %29 : vector<32x128xi1> to vector<32x128xi8>
    %c2_i8 = arith.constant 2 : i8
    %31 = vector.broadcast %c2_i8 : i8 to vector<32x128xi8>
    %32 = arith.andi %0, %31 : vector<32x128xi8>
    %c0_i8_6 = arith.constant 0 : i8
    %33 = vector.broadcast %c0_i8_6 : i8 to vector<32x128xi8>
    %34 = arith.cmpi ne, %32, %33 : vector<32x128xi8>
    %35 = arith.extui %34 : vector<32x128xi1> to vector<32x128xi8>
    %c1_i8 = arith.constant 1 : i8
    %36 = vector.broadcast %c1_i8 : i8 to vector<32x128xi8>
    %37 = arith.andi %0, %36 : vector<32x128xi8>
    %c0_i8_7 = arith.constant 0 : i8
    %38 = vector.broadcast %c0_i8_7 : i8 to vector<32x128xi8>
    %39 = arith.cmpi ne, %37, %38 : vector<32x128xi8>
    %40 = arith.extui %39 : vector<32x128xi1> to vector<32x128xi8>
    %41 = vector.shape_cast %5 : vector<32x128xi8> to vector<32x128x1xi8>
    %42 = vector.shape_cast %10 : vector<32x128xi8> to vector<32x128x1xi8>
    %43 = vector.shape_cast %15 : vector<32x128xi8> to vector<32x128x1xi8>
    %44 = vector.shape_cast %20 : vector<32x128xi8> to vector<32x128x1xi8>
    %45 = vector.shape_cast %25 : vector<32x128xi8> to vector<32x128x1xi8>
    %46 = vector.shape_cast %30 : vector<32x128xi8> to vector<32x128x1xi8>
    %47 = vector.shape_cast %35 : vector<32x128xi8> to vector<32x128x1xi8>
    %48 = vector.shape_cast %40 : vector<32x128xi8> to vector<32x128x1xi8>
    %49 = tpu.concatenate %41, %42, %43, %44, %45, %46, %47, %48 in 2 : vector<32x128x1xi8>, vector<32x128x1xi8>, vector<32x128x1xi8>, vector<32x128x1xi8>, vector<32x128x1xi8>, vector<32x128x1xi8>, vector<32x128x1xi8>, vector<32x128x1xi8> -> vector<32x128x8xi8>
    %50 = vector.shape_cast %49 : vector<32x128x8xi8> to vector<32x1024xi8>
    %c0_8 = arith.constant 0 : index
    %c0_9 = arith.constant 0 : index
    %51 = vector.load %arg2[%c0_8, %c0_9] : memref<32x1024xi8, #tpu.memory_space<vmem>>, vector<32x1024xi8>
    tpu.vector_store %arg2[%c0_8, %c0_9], %50 {strides = array<i32>} : memref<32x1024xi8, #tpu.memory_space<vmem>>, vector<32x1024xi8>,
    return
  }
  func.func @transform_0(%arg0: i32) -> (i32, i32) {
    %c0_i32 = arith.constant 0 : i32
    %c0_i32_0 = arith.constant 0 : i32
    return %arg0, %c0_i32 : i32, i32
  }
  func.func @transform_1(%arg0: i32) -> (i32, i32) {
    %c0_i32 = arith.constant 0 : i32
    %c0_i32_0 = arith.constant 0 : i32
    return %arg0, %c0_i32 : i32, i32
  }
}

module attributes {stable_mosaic.version = 11 : i64} {
  func.func @_all_bits_planemajor_kernel(%arg0: i32, %arg1: memref<32x128xi8, #tpu.memory_space<vmem>>, %arg2: memref<8x32x128xi8, #tpu.memory_space<vmem>>) attributes {dimension_semantics = [#tpu.dimension_semantics<parallel>], iteration_bounds = array<i64: 2>, scalar_prefetch = 0 : i64, scratch_operands = 0 : i64, tpu.core_type = #tpu.core_type<tc>, window_params = [{transform_indices = @transform_0, window_bounds = array<i64: 32, 128>}, {transform_indices = @transform_1, window_bounds = array<i64: 8, 32, 128>}]} {
    %c0 = arith.constant 0 : index
    %c0_0 = arith.constant 0 : index
    %0 = vector.load %arg1[%c0, %c0_0] : memref<32x128xi8, #tpu.memory_space<vmem>>, vector<32x128xi8>
    %c-128_i8 = arith.constant -128 : i8
    %1 = vector.broadcast %c-128_i8 : i8 to vector<32x128xi8>
    %2 = arith.andi %0, %1 : vector<32x128xi8>
    %c0_i8 = arith.constant 0 : i8
    %3 = vector.broadcast %c0_i8 : i8 to vector<32x128xi8>
    %4 = arith.cmpi ne, %2, %3 : vector<32x128xi8>
    %5 = arith.extui %4 : vector<32x128xi1> to vector<32x128xi8>
    %c0_1 = arith.constant 0 : index
    %c0_2 = arith.constant 0 : index
    %c0_3 = arith.constant 0 : index
    %6 = vector.load %arg2[%c0_1, %c0_2, %c0_3] : memref<8x32x128xi8, #tpu.memory_space<vmem>>, vector<1x32x128xi8>
    %7 = vector.shape_cast %6 : vector<1x32x128xi8> to vector<32x128xi8>
    %8 = vector.shape_cast %5 : vector<32x128xi8> to vector<1x32x128xi8>
    tpu.vector_store %arg2[%c0_1, %c0_2, %c0_3], %8 {strides = array<i32>} : memref<8x32x128xi8, #tpu.memory_space<vmem>>, vector<1x32x128xi8>,
    %c64_i8 = arith.constant 64 : i8
    %9 = vector.broadcast %c64_i8 : i8 to vector<32x128xi8>
    %10 = arith.andi %0, %9 : vector<32x128xi8>
    %c0_i8_4 = arith.constant 0 : i8
    %11 = vector.broadcast %c0_i8_4 : i8 to vector<32x128xi8>
    %12 = arith.cmpi ne, %10, %11 : vector<32x128xi8>
    %13 = arith.extui %12 : vector<32x128xi1> to vector<32x128xi8>
    %c1 = arith.constant 1 : index
    %c0_5 = arith.constant 0 : index
    %c0_6 = arith.constant 0 : index
    %14 = vector.load %arg2[%c1, %c0_5, %c0_6] : memref<8x32x128xi8, #tpu.memory_space<vmem>>, vector<1x32x128xi8>
    %15 = vector.shape_cast %14 : vector<1x32x128xi8> to vector<32x128xi8>
    %16 = vector.shape_cast %13 : vector<32x128xi8> to vector<1x32x128xi8>
    tpu.vector_store %arg2[%c1, %c0_5, %c0_6], %16 {strides = array<i32>} : memref<8x32x128xi8, #tpu.memory_space<vmem>>, vector<1x32x128xi8>,
    %c32_i8 = arith.constant 32 : i8
    %17 = vector.broadcast %c32_i8 : i8 to vector<32x128xi8>
    %18 = arith.andi %0, %17 : vector<32x128xi8>
    %c0_i8_7 = arith.constant 0 : i8
    %19 = vector.broadcast %c0_i8_7 : i8 to vector<32x128xi8>
    %20 = arith.cmpi ne, %18, %19 : vector<32x128xi8>
    %21 = arith.extui %20 : vector<32x128xi1> to vector<32x128xi8>
    %c2 = arith.constant 2 : index
    %c0_8 = arith.constant 0 : index
    %c0_9 = arith.constant 0 : index
    %22 = vector.load %arg2[%c2, %c0_8, %c0_9] : memref<8x32x128xi8, #tpu.memory_space<vmem>>, vector<1x32x128xi8>
    %23 = vector.shape_cast %22 : vector<1x32x128xi8> to vector<32x128xi8>
    %24 = vector.shape_cast %21 : vector<32x128xi8> to vector<1x32x128xi8>
    tpu.vector_store %arg2[%c2, %c0_8, %c0_9], %24 {strides = array<i32>} : memref<8x32x128xi8, #tpu.memory_space<vmem>>, vector<1x32x128xi8>,
    %c16_i8 = arith.constant 16 : i8
    %25 = vector.broadcast %c16_i8 : i8 to vector<32x128xi8>
    %26 = arith.andi %0, %25 : vector<32x128xi8>
    %c0_i8_10 = arith.constant 0 : i8
    %27 = vector.broadcast %c0_i8_10 : i8 to vector<32x128xi8>
    %28 = arith.cmpi ne, %26, %27 : vector<32x128xi8>
    %29 = arith.extui %28 : vector<32x128xi1> to vector<32x128xi8>
    %c3 = arith.constant 3 : index
    %c0_11 = arith.constant 0 : index
    %c0_12 = arith.constant 0 : index
    %30 = vector.load %arg2[%c3, %c0_11, %c0_12] : memref<8x32x128xi8, #tpu.memory_space<vmem>>, vector<1x32x128xi8>
    %31 = vector.shape_cast %30 : vector<1x32x128xi8> to vector<32x128xi8>
    %32 = vector.shape_cast %29 : vector<32x128xi8> to vector<1x32x128xi8>
    tpu.vector_store %arg2[%c3, %c0_11, %c0_12], %32 {strides = array<i32>} : memref<8x32x128xi8, #tpu.memory_space<vmem>>, vector<1x32x128xi8>,
    %c8_i8 = arith.constant 8 : i8
    %33 = vector.broadcast %c8_i8 : i8 to vector<32x128xi8>
    %34 = arith.andi %0, %33 : vector<32x128xi8>
    %c0_i8_13 = arith.constant 0 : i8
    %35 = vector.broadcast %c0_i8_13 : i8 to vector<32x128xi8>
    %36 = arith.cmpi ne, %34, %35 : vector<32x128xi8>
    %37 = arith.extui %36 : vector<32x128xi1> to vector<32x128xi8>
    %c4 = arith.constant 4 : index
    %c0_14 = arith.constant 0 : index
    %c0_15 = arith.constant 0 : index
    %38 = vector.load %arg2[%c4, %c0_14, %c0_15] : memref<8x32x128xi8, #tpu.memory_space<vmem>>, vector<1x32x128xi8>
    %39 = vector.shape_cast %38 : vector<1x32x128xi8> to vector<32x128xi8>
    %40 = vector.shape_cast %37 : vector<32x128xi8> to vector<1x32x128xi8>
    tpu.vector_store %arg2[%c4, %c0_14, %c0_15], %40 {strides = array<i32>} : memref<8x32x128xi8, #tpu.memory_space<vmem>>, vector<1x32x128xi8>,
    %c4_i8 = arith.constant 4 : i8
    %41 = vector.broadcast %c4_i8 : i8 to vector<32x128xi8>
    %42 = arith.andi %0, %41 : vector<32x128xi8>
    %c0_i8_16 = arith.constant 0 : i8
    %43 = vector.broadcast %c0_i8_16 : i8 to vector<32x128xi8>
    %44 = arith.cmpi ne, %42, %43 : vector<32x128xi8>
    %45 = arith.extui %44 : vector<32x128xi1> to vector<32x128xi8>
    %c5 = arith.constant 5 : index
    %c0_17 = arith.constant 0 : index
    %c0_18 = arith.constant 0 : index
    %46 = vector.load %arg2[%c5, %c0_17, %c0_18] : memref<8x32x128xi8, #tpu.memory_space<vmem>>, vector<1x32x128xi8>
    %47 = vector.shape_cast %46 : vector<1x32x128xi8> to vector<32x128xi8>
    %48 = vector.shape_cast %45 : vector<32x128xi8> to vector<1x32x128xi8>
    tpu.vector_store %arg2[%c5, %c0_17, %c0_18], %48 {strides = array<i32>} : memref<8x32x128xi8, #tpu.memory_space<vmem>>, vector<1x32x128xi8>,
    %c2_i8 = arith.constant 2 : i8
    %49 = vector.broadcast %c2_i8 : i8 to vector<32x128xi8>
    %50 = arith.andi %0, %49 : vector<32x128xi8>
    %c0_i8_19 = arith.constant 0 : i8
    %51 = vector.broadcast %c0_i8_19 : i8 to vector<32x128xi8>
    %52 = arith.cmpi ne, %50, %51 : vector<32x128xi8>
    %53 = arith.extui %52 : vector<32x128xi1> to vector<32x128xi8>
    %c6 = arith.constant 6 : index
    %c0_20 = arith.constant 0 : index
    %c0_21 = arith.constant 0 : index
    %54 = vector.load %arg2[%c6, %c0_20, %c0_21] : memref<8x32x128xi8, #tpu.memory_space<vmem>>, vector<1x32x128xi8>
    %55 = vector.shape_cast %54 : vector<1x32x128xi8> to vector<32x128xi8>
    %56 = vector.shape_cast %53 : vector<32x128xi8> to vector<1x32x128xi8>
    tpu.vector_store %arg2[%c6, %c0_20, %c0_21], %56 {strides = array<i32>} : memref<8x32x128xi8, #tpu.memory_space<vmem>>, vector<1x32x128xi8>,
    %c1_i8 = arith.constant 1 : i8
    %57 = vector.broadcast %c1_i8 : i8 to vector<32x128xi8>
    %58 = arith.andi %0, %57 : vector<32x128xi8>
    %c0_i8_22 = arith.constant 0 : i8
    %59 = vector.broadcast %c0_i8_22 : i8 to vector<32x128xi8>
    %60 = arith.cmpi ne, %58, %59 : vector<32x128xi8>
    %61 = arith.extui %60 : vector<32x128xi1> to vector<32x128xi8>
    %c7 = arith.constant 7 : index
    %c0_23 = arith.constant 0 : index
    %c0_24 = arith.constant 0 : index
    %62 = vector.load %arg2[%c7, %c0_23, %c0_24] : memref<8x32x128xi8, #tpu.memory_space<vmem>>, vector<1x32x128xi8>
    %63 = vector.shape_cast %62 : vector<1x32x128xi8> to vector<32x128xi8>
    %64 = vector.shape_cast %61 : vector<32x128xi8> to vector<1x32x128xi8>
    tpu.vector_store %arg2[%c7, %c0_23, %c0_24], %64 {strides = array<i32>} : memref<8x32x128xi8, #tpu.memory_space<vmem>>, vector<1x32x128xi8>,
    return
  }
  func.func @transform_0(%arg0: i32) -> (i32, i32) {
    %c0_i32 = arith.constant 0 : i32
    %c0_i32_0 = arith.constant 0 : i32
    return %arg0, %c0_i32 : i32, i32
  }
  func.func @transform_1(%arg0: i32) -> (i32, i32, i32) {
    %c0_i32 = arith.constant 0 : i32
    %c0_i32_0 = arith.constant 0 : i32
    %c0_i32_1 = arith.constant 0 : i32
    return %c0_i32, %arg0, %c0_i32_0 : i32, i32, i32
  }
}

</mosaic_0001>

<bundles_post_ra>
// kernel: tpu_custom_call.1
= control target key start
LH: loop header
LB: loop body
LE: loop exit
PB: predicated region body
PF: predicated region fallthrough
CT: control target
= control target key end

     0   :  { %6 = vsyncpa [#allocation3], 0  ;;  %s583_s0 = inlined_call_operand.hbm [shape: u8[64,128], index: 0, kind: input, shape index: {}]   ;;  %s584_s1 = inlined_call_operand.hbm [shape: u8[8,64,128], index: 1, kind: output, shape index: {}]  }
   0x1   :  { %8 = vsyncpa [#allocation3 + $0x1], 0 }
   0x2   :  { %9 = vsyncpa [#allocation4], 0 }
   0x3   :  { %11 = vsyncpa [#allocation4 + $0x1], 0  ;;  %s452_s6 = smov 0   ;;  %s454_s7 = smov 0  }
   0x4   :  { %s456_s8 = smov 0   ;;  %s458_s9 = smov 0  }
   0x5 LB: > { %s473_s10 = sadd.s32 4294967295, %s436_s9   ;;  %s271_s11 = sadd.s32 4294967294, %s436_s9   ;;  %s436_s9 = sphi %s458_s9, %s594_s9   ;;  %s432_s8 = sphi %s456_s8, %s593_s8   ;;  %s428_s7 = sphi %s454_s7, %s592_s7   ;;  %s424_s6 = sphi %s452_s6, %s591_s6  }
   0x6   : > { %s477_s12 = sadd.s32 1, %s436_s9   ;;  %s24_s13 = sadd.s32 1, %s432_s8 }
   0x7   : > { %s21_s14 = ssub.s32 %s436_s9, %s477_s12  ;;  %p31_p0 = scmp.ne.s32.totalorder %s432_s8, %s428_s7 }
   0x8   : > { %p22_p1 = scmp.eq.s32.totalorder %s21_s14, 0  ;;  %p32_p2 = scmp.eq.s32.totalorder %s436_s9, 0 }
   0x9   : > { %p37_p3 = scmp.ne.s32.totalorder %s428_s7, %s424_s6  ;;  %p38_p4 = scmp.eq.s32.totalorder %s473_s10, 0 }
   0xa   : > { %s489_s15 = scalar_select %p22_p1, %s432_s8, %s24_s13  }
   0xb   : > { %p491_p5 = por %p32_p2, %p31_p0  ;;  %p495_p6 = por %p38_p4, %p37_p3 }
   0xc   : > { %p61_p7 = scmp.eq.s32.totalorder %s473_s10, 1  ;;  %p67_p8 = scmp.eq.s32.totalorder %s271_s11, 1 }
   0xd   : > { %p302_p10 = scmp.lt.s32.totalorder %s436_s9, 2  ;;  %s87_s20 = sand.u32 1, %s432_s8  }
   0xe   : > { %p502_p11 = por %p61_p7, %p31_p0  ;;  %p506_p12 = por %p67_p8, %p37_p3 }
   0xf   : > { %s275_s21 = sshll.u32 %s436_s9, 3  ;;  %s274_s22 = sshll.u32 %s87_s20, 3 }
  0x10   : > { %s95_s25 = scalar_lea.hbm %s583_s0, %s275_s21  ;;  %s91_s27 = scalar_lea.vmem [#allocation2], %s274_s22 }
  0x11   : > { %s97_s26 = sshll.u32 %s95_s25, 4  ;;  %s99_s28 = sshll.u32 %s91_s27, 4  ;;  %s98_s26 = int_to_ptr.hbm [resolvable:$true] %s97_s26  ;;  %s100_s28 = int_to_ptr.vmem [resolvable:$true] %s99_s28 }
  0x12   : > { %p517_p13 = pnand %p302_p10, %p491_p5  ;;  %p276_p0 = scmp.ge.s32.totalorder %s436_s9, 1 }
  0x13   : > { %p104_p1 = scmp.lt.s32.totalorder %s436_s9, 3  ;;  %s88_s30 = scalar_lea.sflag [#allocation3], %s87_s20 }
  0x14   : > { %s340_s2 = sshra.s32 %s98_s26, 4  ;;  %p344_p3 = pneg %p517_p13  ;;  %s341_s2 = int_to_ptr.hbm [resolvable:$true] %s340_s2 }
  0x15   : > { %s342_s3 = scalar_lea.hbm %s341_s2, 8  ;;  %s347_s11 = scalar_lea.hbm %s583_s0, 16 }
  0x16   : > { %p343_p2 = scmp.ne.s32.totalorder %s341_s2, %s342_s3  ;;  %p348_p5 = scmp.lt.s32.totalorder %s341_s2, %s583_s0 }
  0x17   : > { %p349_p8 = scmp.lt.s32.totalorder %s347_s11, %s342_s3 }
  0x18   : > { %p345_p4 = pnand %p344_p3, %p343_p2 }
  0x19   : > { %p350_p10 = por %p349_p8, %p348_p5 }
  0x1a   : > { %p346_p7 = pneg %p345_p4 }
  0x1c   : > { %p351_p9 = pnand %p350_p10, %p346_p7 }
  0x1e   : > { %354 = shalt.err (!%p351_p9)
}
  0x1f   : > { %297 = dma.hbm_to_vmem [thread:$0]  (!%p517_p13), %s98_s26, 128, %s100_s28, %s88_s30  }
  0x20   : > { %p105_p2 = pnand %p276_p0, %p104_p1 }
  0x21   : > { %s538_s16 = sand.u32 (!%p105_p2), 1, %s428_s7  }
  0x22   : > { %108 = sbr.rel (%p105_p2) target bundleno = 60 (0x3c), region = 24  ;;  %s277_s20 = sshll.u32 (!%p105_p2), %s538_s16, 3 }
  0x23   : > { %s111_s21 = scalar_lea.sflag (!%p105_p2), [#allocation3], %s538_s16  ;;  %s114_s22 = scalar_lea.vmem (!%p105_p2), [#allocation2], %s277_s20 }
  0x27   : > { %415 = dma.done.wait (%p495_p6), %s111_s21, 128  }
  0x28   : > { %417 = vsyncadd (%p495_p6), %s111_s21, 4294967168  ;;  %s278_s23 = sshll.u32 %s538_s16, 6  ;;  %v143_v0 = vld [vmem:[%s114_s22] sm:$0xff]  ;;  %s287_s24 = sshll.u32 %s473_s10, 3  ;;  %v438_v8 = vmov 0  }
  0x29   : > { %v144_v1 = vand.u32 2155905152, %v143_v0  ;;  %v148_v2 = vand.u32 1077952576, %v143_v0  ;;  %v153_v3 = vand.u32 538976288, %v143_v0  ;;  %s194_s17 = scalar_lea.hbm %s584_s1, %s287_s24 }
  0x2a   : > { %v158_v4 = vand.u32 269488144, %v143_v0  ;;  %v163_v5 = vand.u32 134744072, %v143_v0  ;;  %v168_v6 = vand.u32 67372036, %v143_v0 }
  0x2b   : > { %vm145_vm0 = vnez %v144_v1  ;;  %vm149_vm1 = vnez %v148_v2  ;;  %vm154_vm2 = vnez %v153_v3  ;;  %v173_v7 = vand.u32 33686018, %v143_v0  ;;  %s133_s10 = scalar_lea.vmem [#allocation5], %s278_s23  ;;  %s197_s28 = sshll.u32 %s194_s17, 4  ;;  %s198_s28 = int_to_ptr.hbm [resolvable:$true] %s197_s28 }
  0x2c   : > { %v146_v9 = vsel %vm145_vm0, 16843009, %v438_v8  ;;  %v150_v10 = vsel %vm149_vm1, 16843009, %v438_v8  ;;  %v155_v11 = vsel %vm154_vm2, 16843009, %v438_v8  ;;  %vm159_vm3 = vnez %v158_v4 }
  0x2d   : > { %147 = vst [vmem:[%s133_s10] sm:$0xff] %v146_v9  ;;  %s195_s27 = sshll.u32 %s133_s10, 4  ;;  %v160_v12 = vsel %vm159_vm3, 16843009, %v438_v8  ;;  %vm164_vm4 = vnez %v163_v5  ;;  %vm169_vm5 = vnez %v168_v6  ;;  %vm174_vm6 = vnez %v173_v7  ;;  %s184_s29 = scalar_lea.sflag [#allocation4], %s538_s16  ;;  %s551_s27 = int_to_ptr.vmem [resolvable:$true] %s195_s27 }
  0x2e   : > { %279 = vst [vmem:[%s133_s10 + $0x8] sm:$0xff] %v150_v10  ;;  %v165_v13 = vsel %vm164_vm4, 16843009, %v438_v8  ;;  %v170_v14 = vsel %vm169_vm5, 16843009, %v438_v8  ;;  %s384_s30 = sshra.s32 %s198_s28, 4  ;;  %s385_s30 = int_to_ptr.hbm [resolvable:$true] %s384_s30 }
  0x2f   : > { %280 = vst [vmem:[%s133_s10 + $0x10] sm:$0xff] %v155_v11  ;;  %v178_v15 = vand.u32 16843009, %v143_v0  ;;  %v175_v16 = vsel %vm174_vm6, 16843009, %v438_v8  ;;  %s386_s2 = scalar_lea.hbm %s385_s30, 64  ;;  %p391_p0 = scmp.lt.s32.totalorder %s385_s30, %s584_s1 }
  0x30   : > { %281 = vst [vmem:[%s133_s10 + $0x18] sm:$0xff] %v160_v12  ;;  %p387_p6 = scmp.ne.s32.totalorder %s385_s30, %s386_s2  ;;  %s390_s5 = scalar_lea.hbm %s584_s1, 128 }
  0x31   : > { %282 = vst [vmem:[%s133_s10 + $0x20] sm:$0xff] %v165_v13  ;;  %vm179_vm7 = vnez %v178_v15  ;;  %p392_p1 = scmp.lt.s32.totalorder %s390_s5, %s386_s2 }
  0x32   : > { %283 = vst [vmem:[%s133_s10 + $0x28] sm:$0xff] %v170_v14  ;;  %v180_v17 = vsel %vm179_vm7, 16843009, %v438_v8  ;;  %p388_p9 = pnand %p387_p6, %p502_p11 }
  0x33   : > { %284 = vst [vmem:[%s133_s10 + $0x30] sm:$0xff] %v175_v16  ;;  %p393_p3 = por %p392_p1, %p391_p0 }
  0x34   : > { %285 = vst [vmem:[%s133_s10 + $0x38] sm:$0xff] %v180_v17  ;;  %p389_p13 = pneg %p388_p9 }
  0x36   : > { %p394_p4 = pnand %p393_p3, %p389_p13 }
  0x38   : > { %397 = shalt.err (!%p394_p4)
}
  0x39   : > { %s439_s14 = smov 128   ;;  %s440_s16 = smov 256  }
  0x3a   : > { %s441_s20 = smov 8  }
  0x3b   : > { %292 = dma.vmem_to_hbm [thread:$0]  (%p502_p11), %s551_s27, 1024, %s198_s28, %s184_s29, %s439_s14, %s440_s16, %s441_s20  }
  0x3c PF: > { %s212_s21 = sand.u32 1, %s424_s6   ;;  %p590_p7 = scmp.ge.s32.totalorder %s436_s9, 2 }
  0x3d   : > { %s213_s22 = scalar_lea.sflag [#allocation4], %s212_s21 }
  0x3e   : > { %p299_p5 = pnand %p590_p7, %p506_p12 }
  0x40   : > { %p300_p8 = pneg %p299_p5 }
  0x42   : > { %419 = dma.done.wait (%p300_p8), %s213_s22, 1024  }
  0x43   : > { %421 = vsyncadd (%p300_p8), %s213_s22, 4294966272  ;;  %p14_p10 = scmp.ge.s32.totalorder %s477_s12, 4   ;;  %s591_s6 = smov %s428_s7 }
  0x44   : > { %s592_s7 = smov %s432_s8  ;;  %s593_s8 = smov %s489_s15 }
  0x45   : > { %s594_s9 = smov %s477_s12  ;;  %16 = sbr.rel (!%p14_p10) target bundleno = 5 (0x5), region = 76 }
  0x4a   :  { %219 = vsyncpa [#allocation3], 1 }
  0x4b   :  { %221 = vsyncpa [#allocation3 + $0x1], 1 }
  0x4c   :  { %222 = vsyncpa [#allocation4], 1 }
  0x4d   :  { %224 = vsyncpa [#allocation4 + $0x1], 1 }

</bundles_post_ra>
